<compile_context>
chip_gen: v7x
topology: tpu7x:2x2x1
jax: 0.10.0
libtpu: 0.0.40
codegen_flags: <defaults>
</compile_context>

<pallas_src>
import functools

import jax
import jax.numpy as jnp
from jax.experimental import pallas as pl
from jax.experimental.pallas import tpu as pltpu


# ----------------------------------------------------------------------------
# Fused kernel: QKV projection + multi-head attention + output projection
# ----------------------------------------------------------------------------
def _fused_attention_kernel(x_ref, wqkv_ref, wout_ref, bout_ref, o_ref, acc_ref,
                            *, bt, n, heads, dim_head, scale):
    """Processes `bt` batch elements (bt*n token rows) per grid step.

    x_ref:    (bt*n, dim)     token rows for this step
    wqkv_ref: (dim, 3*inner)  resident across grid steps (constant index_map)
    wout_ref: (inner, dim)    resident across grid steps
    bout_ref: (1, dim)
    o_ref:    (bt*n, dim)
    acc_ref:  (bt*n, inner)   f32 VMEM scratch holding merged head outputs
    """
    in_dtype = x_ref.dtype
    inner = heads * dim_head

    x = x_ref[...]                                                 # (rows, dim)

    # --- QKV projections: three dots off static (free) Ref slices of the
    #     fused weight; no (rows, 3*inner) f32 intermediate is materialized.
    #     The attention scale is folded into q (rows*inner elems). ---
    q = (jnp.dot(x, wqkv_ref[:, :inner],
                 preferred_element_type=jnp.float32) * scale).astype(in_dtype)
    k = jnp.dot(x, wqkv_ref[:, inner:2 * inner],
                preferred_element_type=jnp.float32).astype(in_dtype)
    v = jnp.dot(x, wqkv_ref[:, 2 * inner:],
                preferred_element_type=jnp.float32).astype(in_dtype)

    # --- per-(batch, head) attention; each head's (n, dim_head) result goes
    #     straight into the scratch accumulator at its static lane offset, so
    #     nothing forces all heads' f32 logits to be live simultaneously and
    #     there is no final concatenate/relayout. ---
    for b in range(bt):
        rows = slice(b * n, (b + 1) * n)
        for h in range(heads):
            cols = slice(h * dim_head, (h + 1) * dim_head)
            qh = q[rows, cols]                                     # (n, Dh)
            kh = k[rows, cols]                                     # (n, Dh)
            vh = v[rows, cols]                                     # (n, Dh)

            # q @ k^T without an explicit transpose: contract the last axes.
            s = jax.lax.dot_general(
                qh, kh, (((1,), (1,)), ((), ())),
                preferred_element_type=jnp.float32)                # (n, n) f32

            # Numerically stable softmax, math kept in f32; EUP reciprocal.
            s = s - jnp.max(s, axis=-1, keepdims=True)
            p = jnp.exp(s)
            p = p * pl.reciprocal(jnp.sum(p, axis=-1, keepdims=True),
                                  approx=True)

            # PV matmul: operands in input dtype, f32 accumulator -> scratch.
            acc_ref[rows, cols] = jnp.dot(
                p.astype(in_dtype), vh, preferred_element_type=jnp.float32)

    # --- output projection + bias (Dropout(0.0) -> identity) ---
    y = jnp.dot(acc_ref[...].astype(in_dtype), wout_ref[...],
                preferred_element_type=jnp.float32)
    y = y + bout_ref[...].astype(jnp.float32)
    o_ref[...] = y.astype(o_ref.dtype)                             # lane-dense


# ----------------------------------------------------------------------------
# Wrapper
# ----------------------------------------------------------------------------
def _choose_batch_tile(b, n, target_rows=256, max_rows=2048):
    """Pick how many batch elements to process per grid step (fills MXU rows)."""
    candidates = [bt for bt in range(1, b + 1)
                  if b % bt == 0 and (bt == b or (bt * n) % 8 == 0)]
    for bt in candidates:
        if bt * n >= target_rows:
            return bt
    under = [bt for bt in candidates if bt * n <= max_rows]
    return under[-1] if under else candidates[0]


def attention_forward(x, params, heads, dim_head):
    """Pallas implementation of Attention.forward. x: (B, N, dim)."""
    b, n, dim = x.shape
    inner = heads * dim_head
    scale = dim_head ** (-0.5)

    w_qkv = params["w_qkv"]                  # (dim, 3*inner)
    w_out = params["w_out"]                  # (inner, dim)
    b_out = params["b_out"].reshape(1, dim)  # (1, dim)

    bt = _choose_batch_tile(b, n)
    rows = bt * n

    # Flatten tokens so the full-depth projections see a (rows, dim) M dim;
    # the reshape is contiguous and free at the XLA level.
    x2d = x.reshape(b * n, dim)

    itemsize = x.dtype.itemsize
    # VMEM budget: double-buffered x/out blocks + (double-buffered) weights,
    # f32 scratch accumulator, q/k/v and per-head logits.  Generous 2x safety
    # factor, floored at the 32 MiB default, capped at v7x's 64 MiB physical.
    est = (2 * 2 * rows * dim * itemsize
           + 2 * (dim * 3 * inner + inner * dim + dim) * itemsize
           + rows * inner * 4
           + 3 * rows * inner * itemsize
           + 2 * n * n * 4)
    vmem_limit = int(min(max(2 * est + (4 << 20), 32 << 20), 64 << 20))

    flops = (2 * b * n * dim * 3 * inner          # QKV projection
             + 4 * b * heads * n * n * dim_head   # QK^T + PV
             + 2 * b * n * inner * dim)           # output projection
    transcendentals = b * heads * n * n           # softmax exp
    bytes_accessed = itemsize * (2 * b * n * dim
                                 + dim * 3 * inner + inner * dim + dim)

    kernel = functools.partial(_fused_attention_kernel, bt=bt, n=n,
                               heads=heads, dim_head=dim_head, scale=scale)

    out2d = pl.pallas_call(
        kernel,
        out_shape=jax.ShapeDtypeStruct((b * n, dim), x.dtype),
        grid=(b // bt,),
        in_specs=[
            pl.BlockSpec((rows, dim), lambda i: (i, 0)),
            # Constant index_maps: weights stay resident in VMEM across steps.
            pl.BlockSpec((dim, 3 * inner), lambda i: (0, 0)),
            pl.BlockSpec((inner, dim), lambda i: (0, 0)),
            pl.BlockSpec((1, dim), lambda i: (0, 0)),
        ],
        out_specs=pl.BlockSpec((rows, dim), lambda i: (i, 0)),
        scratch_shapes=[pltpu.VMEM((rows, inner), jnp.float32)],
        compiler_params=pltpu.CompilerParams(
            dimension_semantics=("parallel",),
            vmem_limit_bytes=vmem_limit),
        cost_estimate=pl.CostEstimate(
            flops=flops, transcendentals=transcendentals,
            bytes_accessed=bytes_accessed),
    )(x2d, w_qkv, w_out, b_out)

    return out2d.reshape(b, n, dim)


# ----------------------------------------------------------------------------
# Deterministic parameter init (PyTorch nn.Linear-style uniform init)
# ----------------------------------------------------------------------------
def init_params(key, dim, heads, dim_head, dtype=jnp.float32):
    inner_dim = heads * dim_head
    k1, k2, k3 = jax.random.split(key, 3)
    bound_qkv = 1.0 / (dim ** 0.5)
    bound_out = 1.0 / (inner_dim ** 0.5)
    return {
        # stored as (in, out) so forward is x @ W
        "w_qkv": jax.random.uniform(
            k1, (dim, inner_dim * 3), dtype, -bound_qkv, bound_qkv),
        "w_out": jax.random.uniform(
            k2, (inner_dim, dim), dtype, -bound_out, bound_out),
        "b_out": jax.random.uniform(k3, (dim,), dtype, -bound_out, bound_out),
    }


# ----------------------------------------------------------------------------
# Reference (pure JAX) for sanity check
# ----------------------------------------------------------------------------
def attention_reference(x, params, heads, dim_head):
    b, n, dim = x.shape
    scale = dim_head ** (-0.5)
    qkv = x @ params["w_qkv"]
    q, k, v = jnp.split(qkv, 3, axis=-1)

    def rearr(t):
        return t.reshape(b, n, heads, dim_head).transpose(0, 2, 1, 3)

    q, k, v = rearr(q), rearr(k), rearr(v)
    dots = jnp.einsum("bhid,bhjd->bhij", q, k) * scale
    attn = jax.nn.softmax(dots, axis=-1)
    out = jnp.einsum("bhij,bhjd->bhid", attn, v)
    out = out.transpose(0, 2, 1, 3).reshape(b, n, heads * dim_head)
    return out @ params["w_out"] + params["b_out"]


# ----------------------------------------------------------------------------
if __name__ == "__main__":
    # Small shapes consistent with the module: batch=2, seq=8, dim=32,
    # heads=4, dim_head=16 -> inner_dim=64 (project_out=True).
    B, N, DIM = 2, 8, 32
    HEADS, DIM_HEAD = 4, 16

    key = jax.random.PRNGKey(0)
    kx, kp = jax.random.split(key)
    x = jax.random.normal(kx, (B, N, DIM), dtype=jnp.float32)
    params = init_params(kp, DIM, HEADS, DIM_HEAD)

    y = attention_forward(x, params, HEADS, DIM_HEAD)
    y = jax.block_until_ready(y)

    y_ref = attention_reference(x, params, HEADS, DIM_HEAD)
    assert y.shape == (B, N, DIM)
    # Tolerance accounts for the EUP approximate reciprocal in the softmax
    # denominator (relative error ~1e-3 worst case); everything else is f32.
    assert jnp.allclose(y, y_ref, atol=2e-3, rtol=2e-3), "mismatch vs JAX reference"

    print("KERNEL_OK")
</pallas_src>

<mosaic_0001>
module attributes {stable_mosaic.version = 11 : i64} {
  func.func @_fused_attention_kernel(%arg0: i32, %arg1: memref<16x32xf32, #tpu.memory_space<vmem>>, %arg2: memref<32x192xf32, #tpu.memory_space<vmem>>, %arg3: memref<64x32xf32, #tpu.memory_space<vmem>>, %arg4: memref<1x32xf32, #tpu.memory_space<vmem>>, %arg5: memref<16x32xf32, #tpu.memory_space<vmem>>, %arg6: memref<16x64xf32, #tpu.memory_space<vmem>>) attributes {dimension_semantics = [#tpu.dimension_semantics<parallel>], iteration_bounds = array<i64: 1>, scalar_prefetch = 0 : i64, scratch_operands = 1 : i64, tpu.core_type = #tpu.core_type<tc>, window_params = [{transform_indices = @transform_0, window_bounds = array<i64: 16, 32>}, {pipeline_mode = #tpu.pipeline_mode<synchronous>, transform_indices = @transform_1, window_bounds = array<i64: 32, 192>}, {pipeline_mode = #tpu.pipeline_mode<synchronous>, transform_indices = @transform_2, window_bounds = array<i64: 64, 32>}, {pipeline_mode = #tpu.pipeline_mode<synchronous>, transform_indices = @transform_3, window_bounds = array<i64: 1, 32>}, {transform_indices = @transform_4, window_bounds = array<i64: 16, 32>}]} {
    %c0 = arith.constant 0 : index
    %c0_0 = arith.constant 0 : index
    %0 = vector.load %arg1[%c0, %c0_0] : memref<16x32xf32, #tpu.memory_space<vmem>>, vector<16x32xf32>
    %c0_1 = arith.constant 0 : index
    %c0_2 = arith.constant 0 : index
    %1 = vector.load %arg2[%c0_1, %c0_2] : memref<32x192xf32, #tpu.memory_space<vmem>>, vector<32x64xf32>
    %cst = arith.constant dense<0.000000e+00> : vector<16x64xf32>
    %2 = tpu.matmul %0, %1, %cst {dimension_numbers = #tpu.dot_dimension_numbers<[1], [0], [0], [1], [0, 0, 1, 1], [], []>} : vector<16x32xf32>, vector<32x64xf32>, vector<16x64xf32> -> vector<16x64xf32>
    %cst_3 = arith.constant 2.500000e-01 : f32
    %3 = vector.broadcast %cst_3 : f32 to vector<16x64xf32>
    %4 = arith.mulf %2, %3 : vector<16x64xf32>
    %c0_4 = arith.constant 0 : index
    %c64 = arith.constant 64 : index
    %5 = vector.load %arg2[%c0_4, %c64] : memref<32x192xf32, #tpu.memory_space<vmem>>, vector<32x64xf32>
    %cst_5 = arith.constant dense<0.000000e+00> : vector<16x64xf32>
    %6 = tpu.matmul %0, %5, %cst_5 {dimension_numbers = #tpu.dot_dimension_numbers<[1], [0], [0], [1], [0, 0, 1, 1], [], []>} : vector<16x32xf32>, vector<32x64xf32>, vector<16x64xf32> -> vector<16x64xf32>
    %c0_6 = arith.constant 0 : index
    %c128 = arith.constant 128 : index
    %7 = vector.load %arg2[%c0_6, %c128] : memref<32x192xf32, #tpu.memory_space<vmem>>, vector<32x64xf32>
    %cst_7 = arith.constant dense<0.000000e+00> : vector<16x64xf32>
    %8 = tpu.matmul %0, %7, %cst_7 {dimension_numbers = #tpu.dot_dimension_numbers<[1], [0], [0], [1], [0, 0, 1, 1], [], []>} : vector<16x32xf32>, vector<32x64xf32>, vector<16x64xf32> -> vector<16x64xf32>
    %9 = vector.extract_strided_slice %4 {offsets = [0, 0], sizes = [8, 16], strides = [1, 1]} : vector<16x64xf32> to vector<8x16xf32>
    %10 = vector.extract_strided_slice %6 {offsets = [0, 0], sizes = [8, 16], strides = [1, 1]} : vector<16x64xf32> to vector<8x16xf32>
    %11 = vector.extract_strided_slice %8 {offsets = [0, 0], sizes = [8, 16], strides = [1, 1]} : vector<16x64xf32> to vector<8x16xf32>
    %cst_8 = arith.constant dense<0.000000e+00> : vector<8x8xf32>
    %12 = tpu.matmul %9, %10, %cst_8 {dimension_numbers = #tpu.dot_dimension_numbers<[1], [1], [0], [0], [0, 0, 1, 0], [], []>} : vector<8x16xf32>, vector<8x16xf32>, vector<8x8xf32> -> vector<8x8xf32>
    %cst_9 = arith.constant dense<0xFF800000> : vector<8xf32>
    %13 = vector.multi_reduction <maximumf>, %12, %cst_9 [1] : vector<8x8xf32> to vector<8xf32>
    %14 = vector.shape_cast %13 : vector<8xf32> to vector<8x1xf32>
    %15 = vector.broadcast %14 : vector<8x1xf32> to vector<8x8xf32>
    %16 = arith.subf %12, %15 : vector<8x8xf32>
    %17 = math.exp %16 : vector<8x8xf32>
    %cst_10 = arith.constant dense<0.000000e+00> : vector<8xf32>
    %18 = vector.multi_reduction <add>, %17, %cst_10 [1] : vector<8x8xf32> to vector<8xf32>
    %19 = vector.shape_cast %18 : vector<8xf32> to vector<8x1xf32>
    %20 = tpu.reciprocal %19 {approx = true} : vector<8x1xf32> -> vector<8x1xf32>
    %21 = vector.broadcast %20 : vector<8x1xf32> to vector<8x8xf32>
    %22 = arith.mulf %17, %21 : vector<8x8xf32>
    %cst_11 = arith.constant dense<0.000000e+00> : vector<8x16xf32>
    %23 = tpu.matmul %22, %11, %cst_11 {dimension_numbers = #tpu.dot_dimension_numbers<[1], [0], [0], [1], [0, 0, 1, 1], [], []>} : vector<8x8xf32>, vector<8x16xf32>, vector<8x16xf32> -> vector<8x16xf32>
    %c0_12 = arith.constant 0 : index
    %c0_13 = arith.constant 0 : index
    %24 = vector.load %arg6[%c0_12, %c0_13] : memref<16x64xf32, #tpu.memory_space<vmem>>, vector<8x16xf32>
    tpu.vector_store %arg6[%c0_12, %c0_13], %23 {strides = array<i32>} : memref<16x64xf32, #tpu.memory_space<vmem>>, vector<8x16xf32>,
    %25 = vector.extract_strided_slice %4 {offsets = [0, 16], sizes = [8, 16], strides = [1, 1]} : vector<16x64xf32> to vector<8x16xf32>
    %26 = vector.extract_strided_slice %6 {offsets = [0, 16], sizes = [8, 16], strides = [1, 1]} : vector<16x64xf32> to vector<8x16xf32>
    %27 = vector.extract_strided_slice %8 {offsets = [0, 16], sizes = [8, 16], strides = [1, 1]} : vector<16x64xf32> to vector<8x16xf32>
    %cst_14 = arith.constant dense<0.000000e+00> : vector<8x8xf32>
    %28 = tpu.matmul %25, %26, %cst_14 {dimension_numbers = #tpu.dot_dimension_numbers<[1], [1], [0], [0], [0, 0, 1, 0], [], []>} : vector<8x16xf32>, vector<8x16xf32>, vector<8x8xf32> -> vector<8x8xf32>
    %cst_15 = arith.constant dense<0xFF800000> : vector<8xf32>
    %29 = vector.multi_reduction <maximumf>, %28, %cst_15 [1] : vector<8x8xf32> to vector<8xf32>
    %30 = vector.shape_cast %29 : vector<8xf32> to vector<8x1xf32>
    %31 = vector.broadcast %30 : vector<8x1xf32> to vector<8x8xf32>
    %32 = arith.subf %28, %31 : vector<8x8xf32>
    %33 = math.exp %32 : vector<8x8xf32>
    %cst_16 = arith.constant dense<0.000000e+00> : vector<8xf32>
    %34 = vector.multi_reduction <add>, %33, %cst_16 [1] : vector<8x8xf32> to vector<8xf32>
    %35 = vector.shape_cast %34 : vector<8xf32> to vector<8x1xf32>
    %36 = tpu.reciprocal %35 {approx = true} : vector<8x1xf32> -> vector<8x1xf32>
    %37 = vector.broadcast %36 : vector<8x1xf32> to vector<8x8xf32>
    %38 = arith.mulf %33, %37 : vector<8x8xf32>
    %cst_17 = arith.constant dense<0.000000e+00> : vector<8x16xf32>
    %39 = tpu.matmul %38, %27, %cst_17 {dimension_numbers = #tpu.dot_dimension_numbers<[1], [0], [0], [1], [0, 0, 1, 1], [], []>} : vector<8x8xf32>, vector<8x16xf32>, vector<8x16xf32> -> vector<8x16xf32>
    %c0_18 = arith.constant 0 : index
    %c16 = arith.constant 16 : index
    %40 = vector.load %arg6[%c0_18, %c16] : memref<16x64xf32, #tpu.memory_space<vmem>>, vector<8x16xf32>
    tpu.vector_store %arg6[%c0_18, %c16], %39 {strides = array<i32>} : memref<16x64xf32, #tpu.memory_space<vmem>>, vector<8x16xf32>,
    %41 = vector.extract_strided_slice %4 {offsets = [0, 32], sizes = [8, 16], strides = [1, 1]} : vector<16x64xf32> to vector<8x16xf32>
    %42 = vector.extract_strided_slice %6 {offsets = [0, 32], sizes = [8, 16], strides = [1, 1]} : vector<16x64xf32> to vector<8x16xf32>
    %43 = vector.extract_strided_slice %8 {offsets = [0, 32], sizes = [8, 16], strides = [1, 1]} : vector<16x64xf32> to vector<8x16xf32>
    %cst_19 = arith.constant dense<0.000000e+00> : vector<8x8xf32>
    %44 = tpu.matmul %41, %42, %cst_19 {dimension_numbers = #tpu.dot_dimension_numbers<[1], [1], [0], [0], [0, 0, 1, 0], [], []>} : vector<8x16xf32>, vector<8x16xf32>, vector<8x8xf32> -> vector<8x8xf32>
    %cst_20 = arith.constant dense<0xFF800000> : vector<8xf32>
    %45 = vector.multi_reduction <maximumf>, %44, %cst_20 [1] : vector<8x8xf32> to vector<8xf32>
    %46 = vector.shape_cast %45 : vector<8xf32> to vector<8x1xf32>
    %47 = vector.broadcast %46 : vector<8x1xf32> to vector<8x8xf32>
    %48 = arith.subf %44, %47 : vector<8x8xf32>
    %49 = math.exp %48 : vector<8x8xf32>
    %cst_21 = arith.constant dense<0.000000e+00> : vector<8xf32>
    %50 = vector.multi_reduction <add>, %49, %cst_21 [1] : vector<8x8xf32> to vector<8xf32>
    %51 = vector.shape_cast %50 : vector<8xf32> to vector<8x1xf32>
    %52 = tpu.reciprocal %51 {approx = true} : vector<8x1xf32> -> vector<8x1xf32>
    %53 = vector.broadcast %52 : vector<8x1xf32> to vector<8x8xf32>
    %54 = arith.mulf %49, %53 : vector<8x8xf32>
    %cst_22 = arith.constant dense<0.000000e+00> : vector<8x16xf32>
    %55 = tpu.matmul %54, %43, %cst_22 {dimension_numbers = #tpu.dot_dimension_numbers<[1], [0], [0], [1], [0, 0, 1, 1], [], []>} : vector<8x8xf32>, vector<8x16xf32>, vector<8x16xf32> -> vector<8x16xf32>
    %c0_23 = arith.constant 0 : index
    %c32 = arith.constant 32 : index
    %56 = vector.load %arg6[%c0_23, %c32] : memref<16x64xf32, #tpu.memory_space<vmem>>, vector<8x16xf32>
    tpu.vector_store %arg6[%c0_23, %c32], %55 {strides = array<i32>} : memref<16x64xf32, #tpu.memory_space<vmem>>, vector<8x16xf32>,
    %57 = vector.extract_strided_slice %4 {offsets = [0, 48], sizes = [8, 16], strides = [1, 1]} : vector<16x64xf32> to vector<8x16xf32>
    %58 = vector.extract_strided_slice %6 {offsets = [0, 48], sizes = [8, 16], strides = [1, 1]} : vector<16x64xf32> to vector<8x16xf32>
    %59 = vector.extract_strided_slice %8 {offsets = [0, 48], sizes = [8, 16], strides = [1, 1]} : vector<16x64xf32> to vector<8x16xf32>
    %cst_24 = arith.constant dense<0.000000e+00> : vector<8x8xf32>
    %60 = tpu.matmul %57, %58, %cst_24 {dimension_numbers = #tpu.dot_dimension_numbers<[1], [1], [0], [0], [0, 0, 1, 0], [], []>} : vector<8x16xf32>, vector<8x16xf32>, vector<8x8xf32> -> vector<8x8xf32>
    %cst_25 = arith.constant dense<0xFF800000> : vector<8xf32>
    %61 = vector.multi_reduction <maximumf>, %60, %cst_25 [1] : vector<8x8xf32> to vector<8xf32>
    %62 = vector.shape_cast %61 : vector<8xf32> to vector<8x1xf32>
    %63 = vector.broadcast %62 : vector<8x1xf32> to vector<8x8xf32>
    %64 = arith.subf %60, %63 : vector<8x8xf32>
    %65 = math.exp %64 : vector<8x8xf32>
    %cst_26 = arith.constant dense<0.000000e+00> : vector<8xf32>
    %66 = vector.multi_reduction <add>, %65, %cst_26 [1] : vector<8x8xf32> to vector<8xf32>
    %67 = vector.shape_cast %66 : vector<8xf32> to vector<8x1xf32>
    %68 = tpu.reciprocal %67 {approx = true} : vector<8x1xf32> -> vector<8x1xf32>
    %69 = vector.broadcast %68 : vector<8x1xf32> to vector<8x8xf32>
    %70 = arith.mulf %65, %69 : vector<8x8xf32>
    %cst_27 = arith.constant dense<0.000000e+00> : vector<8x16xf32>
    %71 = tpu.matmul %70, %59, %cst_27 {dimension_numbers = #tpu.dot_dimension_numbers<[1], [0], [0], [1], [0, 0, 1, 1], [], []>} : vector<8x8xf32>, vector<8x16xf32>, vector<8x16xf32> -> vector<8x16xf32>
    %c0_28 = arith.constant 0 : index
    %c48 = arith.constant 48 : index
    %72 = vector.load %arg6[%c0_28, %c48] : memref<16x64xf32, #tpu.memory_space<vmem>>, vector<8x16xf32>
    tpu.vector_store %arg6[%c0_28, %c48], %71 {strides = array<i32>} : memref<16x64xf32, #tpu.memory_space<vmem>>, vector<8x16xf32>,
    %73 = vector.extract_strided_slice %4 {offsets = [8, 0], sizes = [8, 16], strides = [1, 1]} : vector<16x64xf32> to vector<8x16xf32>
    %74 = vector.extract_strided_slice %6 {offsets = [8, 0], sizes = [8, 16], strides = [1, 1]} : vector<16x64xf32> to vector<8x16xf32>
    %75 = vector.extract_strided_slice %8 {offsets = [8, 0], sizes = [8, 16], strides = [1, 1]} : vector<16x64xf32> to vector<8x16xf32>
    %cst_29 = arith.constant dense<0.000000e+00> : vector<8x8xf32>
    %76 = tpu.matmul %73, %74, %cst_29 {dimension_numbers = #tpu.dot_dimension_numbers<[1], [1], [0], [0], [0, 0, 1, 0], [], []>} : vector<8x16xf32>, vector<8x16xf32>, vector<8x8xf32> -> vector<8x8xf32>
    %cst_30 = arith.constant dense<0xFF800000> : vector<8xf32>
    %77 = vector.multi_reduction <maximumf>, %76, %cst_30 [1] : vector<8x8xf32> to vector<8xf32>
    %78 = vector.shape_cast %77 : vector<8xf32> to vector<8x1xf32>
    %79 = vector.broadcast %78 : vector<8x1xf32> to vector<8x8xf32>
    %80 = arith.subf %76, %79 : vector<8x8xf32>
    %81 = math.exp %80 : vector<8x8xf32>
    %cst_31 = arith.constant dense<0.000000e+00> : vector<8xf32>
    %82 = vector.multi_reduction <add>, %81, %cst_31 [1] : vector<8x8xf32> to vector<8xf32>
    %83 = vector.shape_cast %82 : vector<8xf32> to vector<8x1xf32>
    %84 = tpu.reciprocal %83 {approx = true} : vector<8x1xf32> -> vector<8x1xf32>
    %85 = vector.broadcast %84 : vector<8x1xf32> to vector<8x8xf32>
    %86 = arith.mulf %81, %85 : vector<8x8xf32>
    %cst_32 = arith.constant dense<0.000000e+00> : vector<8x16xf32>
    %87 = tpu.matmul %86, %75, %cst_32 {dimension_numbers = #tpu.dot_dimension_numbers<[1], [0], [0], [1], [0, 0, 1, 1], [], []>} : vector<8x8xf32>, vector<8x16xf32>, vector<8x16xf32> -> vector<8x16xf32>
    %c8 = arith.constant 8 : index
    %c0_33 = arith.constant 0 : index
    %88 = vector.load %arg6[%c8, %c0_33] : memref<16x64xf32, #tpu.memory_space<vmem>>, vector<8x16xf32>
    tpu.vector_store %arg6[%c8, %c0_33], %87 {strides = array<i32>} : memref<16x64xf32, #tpu.memory_space<vmem>>, vector<8x16xf32>,
    %89 = vector.extract_strided_slice %4 {offsets = [8, 16], sizes = [8, 16], strides = [1, 1]} : vector<16x64xf32> to vector<8x16xf32>
    %90 = vector.extract_strided_slice %6 {offsets = [8, 16], sizes = [8, 16], strides = [1, 1]} : vector<16x64xf32> to vector<8x16xf32>
    %91 = vector.extract_strided_slice %8 {offsets = [8, 16], sizes = [8, 16], strides = [1, 1]} : vector<16x64xf32> to vector<8x16xf32>
    %cst_34 = arith.constant dense<0.000000e+00> : vector<8x8xf32>
    %92 = tpu.matmul %89, %90, %cst_34 {dimension_numbers = #tpu.dot_dimension_numbers<[1], [1], [0], [0], [0, 0, 1, 0], [], []>} : vector<8x16xf32>, vector<8x16xf32>, vector<8x8xf32> -> vector<8x8xf32>
    %cst_35 = arith.constant dense<0xFF800000> : vector<8xf32>
    %93 = vector.multi_reduction <maximumf>, %92, %cst_35 [1] : vector<8x8xf32> to vector<8xf32>
    %94 = vector.shape_cast %93 : vector<8xf32> to vector<8x1xf32>
    %95 = vector.broadcast %94 : vector<8x1xf32> to vector<8x8xf32>
    %96 = arith.subf %92, %95 : vector<8x8xf32>
    %97 = math.exp %96 : vector<8x8xf32>
    %cst_36 = arith.constant dense<0.000000e+00> : vector<8xf32>
    %98 = vector.multi_reduction <add>, %97, %cst_36 [1] : vector<8x8xf32> to vector<8xf32>
    %99 = vector.shape_cast %98 : vector<8xf32> to vector<8x1xf32>
    %100 = tpu.reciprocal %99 {approx = true} : vector<8x1xf32> -> vector<8x1xf32>
    %101 = vector.broadcast %100 : vector<8x1xf32> to vector<8x8xf32>
    %102 = arith.mulf %97, %101 : vector<8x8xf32>
    %cst_37 = arith.constant dense<0.000000e+00> : vector<8x16xf32>
    %103 = tpu.matmul %102, %91, %cst_37 {dimension_numbers = #tpu.dot_dimension_numbers<[1], [0], [0], [1], [0, 0, 1, 1], [], []>} : vector<8x8xf32>, vector<8x16xf32>, vector<8x16xf32> -> vector<8x16xf32>
    %c8_38 = arith.constant 8 : index
    %c16_39 = arith.constant 16 : index
    %104 = vector.load %arg6[%c8_38, %c16_39] : memref<16x64xf32, #tpu.memory_space<vmem>>, vector<8x16xf32>
    tpu.vector_store %arg6[%c8_38, %c16_39], %103 {strides = array<i32>} : memref<16x64xf32, #tpu.memory_space<vmem>>, vector<8x16xf32>,
    %105 = vector.extract_strided_slice %4 {offsets = [8, 32], sizes = [8, 16], strides = [1, 1]} : vector<16x64xf32> to vector<8x16xf32>
    %106 = vector.extract_strided_slice %6 {offsets = [8, 32], sizes = [8, 16], strides = [1, 1]} : vector<16x64xf32> to vector<8x16xf32>
    %107 = vector.extract_strided_slice %8 {offsets = [8, 32], sizes = [8, 16], strides = [1, 1]} : vector<16x64xf32> to vector<8x16xf32>
    %cst_40 = arith.constant dense<0.000000e+00> : vector<8x8xf32>
    %108 = tpu.matmul %105, %106, %cst_40 {dimension_numbers = #tpu.dot_dimension_numbers<[1], [1], [0], [0], [0, 0, 1, 0], [], []>} : vector<8x16xf32>, vector<8x16xf32>, vector<8x8xf32> -> vector<8x8xf32>
    %cst_41 = arith.constant dense<0xFF800000> : vector<8xf32>
    %109 = vector.multi_reduction <maximumf>, %108, %cst_41 [1] : vector<8x8xf32> to vector<8xf32>
    %110 = vector.shape_cast %109 : vector<8xf32> to vector<8x1xf32>
    %111 = vector.broadcast %110 : vector<8x1xf32> to vector<8x8xf32>
    %112 = arith.subf %108, %111 : vector<8x8xf32>
    %113 = math.exp %112 : vector<8x8xf32>
    %cst_42 = arith.constant dense<0.000000e+00> : vector<8xf32>
    %114 = vector.multi_reduction <add>, %113, %cst_42 [1] : vector<8x8xf32> to vector<8xf32>
    %115 = vector.shape_cast %114 : vector<8xf32> to vector<8x1xf32>
    %116 = tpu.reciprocal %115 {approx = true} : vector<8x1xf32> -> vector<8x1xf32>
    %117 = vector.broadcast %116 : vector<8x1xf32> to vector<8x8xf32>
    %118 = arith.mulf %113, %117 : vector<8x8xf32>
    %cst_43 = arith.constant dense<0.000000e+00> : vector<8x16xf32>
    %119 = tpu.matmul %118, %107, %cst_43 {dimension_numbers = #tpu.dot_dimension_numbers<[1], [0], [0], [1], [0, 0, 1, 1], [], []>} : vector<8x8xf32>, vector<8x16xf32>, vector<8x16xf32> -> vector<8x16xf32>
    %c8_44 = arith.constant 8 : index
    %c32_45 = arith.constant 32 : index
    %120 = vector.load %arg6[%c8_44, %c32_45] : memref<16x64xf32, #tpu.memory_space<vmem>>, vector<8x16xf32>
    tpu.vector_store %arg6[%c8_44, %c32_45], %119 {strides = array<i32>} : memref<16x64xf32, #tpu.memory_space<vmem>>, vector<8x16xf32>,
    %121 = vector.extract_strided_slice %4 {offsets = [8, 48], sizes = [8, 16], strides = [1, 1]} : vector<16x64xf32> to vector<8x16xf32>
    %122 = vector.extract_strided_slice %6 {offsets = [8, 48], sizes = [8, 16], strides = [1, 1]} : vector<16x64xf32> to vector<8x16xf32>
    %123 = vector.extract_strided_slice %8 {offsets = [8, 48], sizes = [8, 16], strides = [1, 1]} : vector<16x64xf32> to vector<8x16xf32>
    %cst_46 = arith.constant dense<0.000000e+00> : vector<8x8xf32>
    %124 = tpu.matmul %121, %122, %cst_46 {dimension_numbers = #tpu.dot_dimension_numbers<[1], [1], [0], [0], [0, 0, 1, 0], [], []>} : vector<8x16xf32>, vector<8x16xf32>, vector<8x8xf32> -> vector<8x8xf32>
    %cst_47 = arith.constant dense<0xFF800000> : vector<8xf32>
    %125 = vector.multi_reduction <maximumf>, %124, %cst_47 [1] : vector<8x8xf32> to vector<8xf32>
    %126 = vector.shape_cast %125 : vector<8xf32> to vector<8x1xf32>
    %127 = vector.broadcast %126 : vector<8x1xf32> to vector<8x8xf32>
    %128 = arith.subf %124, %127 : vector<8x8xf32>
    %129 = math.exp %128 : vector<8x8xf32>
    %cst_48 = arith.constant dense<0.000000e+00> : vector<8xf32>
    %130 = vector.multi_reduction <add>, %129, %cst_48 [1] : vector<8x8xf32> to vector<8xf32>
    %131 = vector.shape_cast %130 : vector<8xf32> to vector<8x1xf32>
    %132 = tpu.reciprocal %131 {approx = true} : vector<8x1xf32> -> vector<8x1xf32>
    %133 = vector.broadcast %132 : vector<8x1xf32> to vector<8x8xf32>
    %134 = arith.mulf %129, %133 : vector<8x8xf32>
    %cst_49 = arith.constant dense<0.000000e+00> : vector<8x16xf32>
    %135 = tpu.matmul %134, %123, %cst_49 {dimension_numbers = #tpu.dot_dimension_numbers<[1], [0], [0], [1], [0, 0, 1, 1], [], []>} : vector<8x8xf32>, vector<8x16xf32>, vector<8x16xf32> -> vector<8x16xf32>
    %c8_50 = arith.constant 8 : index
    %c48_51 = arith.constant 48 : index
    %136 = vector.load %arg6[%c8_50, %c48_51] : memref<16x64xf32, #tpu.memory_space<vmem>>, vector<8x16xf32>
    tpu.vector_store %arg6[%c8_50, %c48_51], %135 {strides = array<i32>} : memref<16x64xf32, #tpu.memory_space<vmem>>, vector<8x16xf32>,
    %c0_52 = arith.constant 0 : index
    %c0_53 = arith.constant 0 : index
    %137 = vector.load %arg6[%c0_52, %c0_53] : memref<16x64xf32, #tpu.memory_space<vmem>>, vector<16x64xf32>
    %c0_54 = arith.constant 0 : index
    %c0_55 = arith.constant 0 : index
    %138 = vector.load %arg3[%c0_54, %c0_55] : memref<64x32xf32, #tpu.memory_space<vmem>>, vector<64x32xf32>
    %cst_56 = arith.constant dense<0.000000e+00> : vector<16x32xf32>
    %139 = tpu.matmul %137, %138, %cst_56 {dimension_numbers = #tpu.dot_dimension_numbers<[1], [0], [0], [1], [0, 0, 1, 1], [], []>} : vector<16x64xf32>, vector<64x32xf32>, vector<16x32xf32> -> vector<16x32xf32>
    %c0_57 = arith.constant 0 : index
    %c0_58 = arith.constant 0 : index
    %140 = vector.load %arg4[%c0_57, %c0_58] : memref<1x32xf32, #tpu.memory_space<vmem>>, vector<1x32xf32>
    %141 = vector.broadcast %140 : vector<1x32xf32> to vector<16x32xf32>
    %142 = arith.addf %139, %141 : vector<16x32xf32>
    %c0_59 = arith.constant 0 : index
    %c0_60 = arith.constant 0 : index
    %143 = vector.load %arg5[%c0_59, %c0_60] : memref<16x32xf32, #tpu.memory_space<vmem>>, vector<16x32xf32>
    tpu.vector_store %arg5[%c0_59, %c0_60], %142 {strides = array<i32>} : memref<16x32xf32, #tpu.memory_space<vmem>>, vector<16x32xf32>,
    return
  }
  func.func @transform_0(%arg0: i32) -> (i32, i32) {
    %c0_i32 = arith.constant 0 : i32
    %c0_i32_0 = arith.constant 0 : i32
    return %arg0, %c0_i32 : i32, i32
  }
  func.func @transform_1(%arg0: i32) -> (i32, i32) {
    %c0_i32 = arith.constant 0 : i32
    %c0_i32_0 = arith.constant 0 : i32
    %c0_i32_1 = arith.constant 0 : i32
    return %c0_i32, %c0_i32_0 : i32, i32
  }
  func.func @transform_2(%arg0: i32) -> (i32, i32) {
    %c0_i32 = arith.constant 0 : i32
    %c0_i32_0 = arith.constant 0 : i32
    %c0_i32_1 = arith.constant 0 : i32
    return %c0_i32, %c0_i32_0 : i32, i32
  }
  func.func @transform_3(%arg0: i32) -> (i32, i32) {
    %c0_i32 = arith.constant 0 : i32
    %c0_i32_0 = arith.constant 0 : i32
    %c0_i32_1 = arith.constant 0 : i32
    return %c0_i32, %c0_i32_0 : i32, i32
  }
  func.func @transform_4(%arg0: i32) -> (i32, i32) {
    %c0_i32 = arith.constant 0 : i32
    %c0_i32_0 = arith.constant 0 : i32
    return %arg0, %c0_i32 : i32, i32
  }
}

</mosaic_0001>

<bundles_post_ra>
// kernel: tpu_custom_call.1
= control target key start
LH: loop header
LB: loop body
LE: loop exit
PB: predicated region body
PF: predicated region fallthrough
CT: control target
= control target key end

     0   :  { %vm24_vm0 = vcmask 261120   ;;  %s2341_s0 = inlined_call_operand.vmem [shape: f32[16,32], index: 0, kind: input, shape index: {}]   ;;  %s2342_s1 = inlined_call_operand.vmem [shape: f32[32,192], index: 1, kind: input, shape index: {}]   ;;  %s2343_s2 = inlined_call_operand.vmem [shape: f32[64,32], index: 2, kind: input, shape index: {}]   ;;  %s2344_s3 = inlined_call_operand.vmem [shape: f32[1,32], index: 3, kind: input, shape index: {}]   ;;  %s2345_s4 = inlined_call_operand.hbm [shape: f32[16,32], index: 4, kind: output, shape index: {}]  }
   0x1   :  { %v20_v0 = vld [vmem:[%s2342_s1] sm:$0xff]  ;;  %v21_v1 = vld [vmem:[%s2342_s1 + $0x10] sm:$0xff] }
   0x2   :  { %v22_v2 = vld [vmem:[%s2342_s1 + $0x20] sm:$0xff]  ;;  %v2021_v3 = vpack.i.bf16 %v21_v1, %v20_v0  ;;  %v23_v4 = vld [vmem:[%s2342_s1 + $0x30] sm:$0xff]  ;;  %v1969_v5 = vpack.c.bf16 %v21_v1, %v20_v0 }
   0x3   :  { %v18_v6 = vld [vmem:[%s2341_s0] sm:$0xff]  ;;  %v1973_v7 = vpack.c.bf16 %v23_v4, %v22_v2 }
   0x4   :  { %1845 = vmatprep.mubr.msk.f32.mxu1 %vm24_vm0, %v18_v6  ;;  %1867 = vmatprep.mubr.msk.f32.mxu0 %vm24_vm0, %v18_v6 }
   0x5   :  { %9 = vsyncpa [#allocation4], 0  ;;  %s2087_s25 = smov 64   ;;  %v2026_v8 = vpack.i.bf16 %v23_v4, %v22_v2  ;;  %1970 = vmatprep.subr.bf16.mxu1 %v1969_v5  ;;  %v19_v9 = vld [vmem:[%s2341_s0 + $0x8] sm:$0xff]  ;;  %v2088_v18 = vmov 0.0   ;;  %vm2089_vm1 = vmmov 0  }
   0x6   :  { %2022 = vrot.lane.b32.xlu0 %v2021_v3, %s2087_s25  ;;  %1972 = vmatpush3.bf16.msra.mxu1 %v1969_v5  ;;  %v199_v21 = vld [vmem:[%s2342_s1 + $0x8] sm:$0xff]  ;;  %v200_v22 = vld [vmem:[%s2342_s1 + $0x18] sm:$0xff]  ;;  %vm278_vm2 = vcmask 130048   ;;  %s2090_s9 = smov 96   ;;  %s2091_s10 = smov 112   ;;  %vm355_vm3 = vcmask 64512  }
   0x7   :  { %1974 = vmatprep.subr.bf16.mxu1 %v1973_v7  ;;  %v201_v23 = vld [vmem:[%s2342_s1 + $0x28] sm:$0xff]  ;;  %v1985_v24 = vpack.c.bf16 %v200_v22, %v199_v21  ;;  %v202_v25 = vld [vmem:[%s2342_s1 + $0x38] sm:$0xff]  ;;  %s2092_s1 = smov 80   ;;  %s2093_s11 = smov 16   ;;  %vm611_vm4 = vcmask 261248   ;;  %vm782_vm5 = vcmask 392448  }
   0x8   :  { %v1989_v26 = vpack.c.bf16 %v202_v25, %v201_v23  ;;  %s2094_s12 = smov 32   ;;  %s2095_s21 = smov 48   ;;  %vm953_vm6 = vcmask 523648   ;;  %vm1644_vm7 = vcmask 523264  }
   0x9   :  { %1986 = vmatprep.subr.bf16.mxu0 %v1985_v24  ;;  %s2096_s30 = smov [#allocation3]  }
   0xa   :  { %2027 = vrot.lane.b32.xlu0 %v2026_v8, %s2087_s25  ;;  %1976 = vmatpush3.bf16.msra.mxu1 %v1973_v7  ;;  %s1733_s5 = sshll.u32 %s2096_s30, 4  ;;  %s1734_s5 = int_to_ptr.vmem [resolvable:$true] %s1733_s5 }
   0xb   :  { %1988 = vmatpush3.bf16.msra.mxu0 %v1985_v24  ;;  %s2063_s6 = scalar_lea.vmem %s1734_s5, 256  ;;  %p2068_p1 = scmp.lt.s32.totalorder %s1734_s5, %s1734_s5 }
   0xc   :  { %1990 = vmatprep.subr.bf16.mxu0 %v1989_v26  ;;  %p2064_p0 = scmp.ne.s32.totalorder %s1734_s5, %s2063_s6  ;;  %p2069_p2 = scmp.lt.s32.totalorder %s2063_s6, %s2063_s6 }
   0xd   :  { %1846 = vmatmul.mubr.msk.f32.vlgmr.msra.gmra.mrb[0].mxu1 %vm24_vm0, %v19_v9 }
   0xe   :  { %1856 = vmatprep.mubr.msk.f32.mxu1 %vm24_vm0, %v18_v6  ;;  %p2070_p3 = por %p2069_p2, %p2068_p1 }
   0xf   :  { %1992 = vmatpush3.bf16.msra.mxu0 %v1989_v26 }
  0x10   :  { %1880 = vmatprep.subr.mxu0 %v2088_v18  ;;  %p2071_p4 = pnand %p2070_p3, %p2064_p0 }
  0x12   :  { %1868 = vmatmul.mubr.msk.f32.vlgmr.msra.gmra.mrb[0].mxu0 %vm24_vm0, %v19_v9 }
  0x13   :  { %1882 = vmatprep.mubr.msk.f32.mxu0 %vm2089_vm1, %v2088_v18 }
  0x78   :  { %v2023_v10 = vpop.permute.xlu0 %2022 }
  0x79   :  { %v2025_v11 = vunpack.i.h.bf16 %v2023_v10  ;;  %v2024_v12 = vunpack.i.l.bf16 %v2023_v10 }
  0x7b   :  { %v1977_v13 = vpack.c.bf16 %v2025_v11, %v2024_v12 }
  0x7c   :  { %v2028_v14 = vpop.permute.xlu0 %2027 }
  0x7d   :  { %v2030_v15 = vunpack.i.h.bf16 %v2028_v14  ;;  %v2029_v16 = vunpack.i.l.bf16 %v2028_v14  ;;  %1978 = vmatprep.subr.bf16.mxu1 %v1977_v13 }
  0x7e   :  { %1980 = vmatpush3.bf16.msra.mxu1 %v1977_v13 }
  0x7f   :  { %v1981_v17 = vpack.c.bf16 %v2030_v15, %v2029_v16 }
  0x81   :  { %1982 = vmatprep.subr.bf16.mxu1 %v1981_v17 }
  0x82   :  { %1984 = vmatpush3.bf16.msra.mxu1 %v1981_v17 }
  0x83   :  { %1870 = vmatprep.subr.mxu1 %v2088_v18 }
  0x85   :  { %1857 = vmatmul.mubr.msk.f32.vlgmr.msra.gmra.mrb[2].mxu1 %vm24_vm0, %v19_v9 }
  0x86   :  { %1872 = vmatprep.mubr.msk.f32.mxu1 %vm2089_vm1, %v2088_v18 }
  0xe0   :  { %v1847_v19 = vpop.f32.mrb[0].mxu1 }
  0xe1   :  { %v97_v20 = vpop.f32.mrb[1].mxu1  ;;  %v107_v30 = vmul.f32 0.25, %v1847_v19 }
  0xe2   :  { %v106_v29 = vmul.f32 0.25, %v97_v20 }
  0xe5   :  { %v2185_v34 = vpop.f32.mrb[0].mxu0 }
  0xe6   :  { %v2188_v35 = vpop.f32.mrb[1].mxu0 }
 0x158   :  { %v1858_v27 = vpop.f32.mrb[2].mxu1 }
 0x159   :  { %v190_v28 = vpop.f32.mrb[3].mxu1 }
 0x15a   :  { %615 = vrot.lane.b32.xlu0 %v190_v28, %s2090_s9  ;;  %443 = vrot.lane.b32.xlu1 %v190_v28, %s2091_s10 }
 0x15b   :  { %1871 = vmatpush3.xpose.msk.msra.mxu1 %vm278_vm2, %v190_v28 }
 0x15c   :  { %1875 = vmatprep.subr.mxu1 %v2088_v18 }
 0x15e   :  { %1873 = vmatmul.mubr.msk.f32.vlgmr.msra.gmra.mrb[4].mxu1 %vm278_vm2, %v106_v29  ;;  %786 = vrot.lane.b32.xlu0 %v190_v28, %s2092_s1 }
 0x15f   :  { %441 = vrot.lane.b32.xlu1 %v106_v29, %s2091_s10  ;;  %1877 = vmatprep.mubr.msk.f32.mxu1 %vm2089_vm1, %v2088_v18 }
 0x160   :  { %1876 = vmatpush3.msra.mxu1 %v2188_v35 }
 0x161   :  { %1885 = vmatprep.subr.mxu1 %v2088_v18 }
 0x162   :  { %1118 = vrot.lane.b32.xlu0 %v1858_v27, %s2091_s10 }
 0x163   :  { %613 = vrot.lane.b32.xlu1 %v106_v29, %s2090_s9 }
 0x166   :  { %1289 = vrot.lane.b32.xlu0 %v1858_v27, %s2090_s9 }
 0x167   :  { %784 = vrot.lane.b32.xlu1 %v106_v29, %s2092_s1 }
 0x16a   :  { %1459 = vrot.lane.b32.xlu0 %v1858_v27, %s2092_s1 }
 0x16b   :  { %1116 = vrot.lane.b32.xlu1 %v107_v30, %s2091_s10 }
 0x16f   :  { %1287 = vrot.lane.b32.xlu1 %v107_v30, %s2090_s9 }
 0x173   :  { %1457 = vrot.lane.b32.xlu1 %v107_v30, %s2092_s1 }
 0x1cc   :  { %v444_v31 = vpop.permute.xlu1 %443  ;;  %v616_v32 = vpop.permute.xlu0 %615 }
 0x1cd   :  { %1881 = vmatpush3.xpose.msk.msra.mxu0 %vm278_vm2, %v444_v31 }
 0x1ce   :  { %1890 = vmatprep.subr.mxu0 %v2088_v18 }
 0x1d0   :  { %v787_v36 = vpop.permute.xlu0 %786 }
 0x1d1   :  { %v442_v33 = vpop.permute.xlu1 %441 }
 0x1d2   :  { %1883 = vmatmul.mubr.msk.f32.vlgmr.msra.gmra.mrb[2].mxu0 %vm278_vm2, %v442_v33 }
 0x1d3   :  { %1891 = vmatpush3.xpose.msk.msra.mxu0 %vm278_vm2, %v616_v32  ;;  %1892 = vmatprep.mubr.msk.f32.mxu0 %vm2089_vm1, %v2088_v18 }
 0x1d4   :  { %1900 = vmatprep.subr.mxu0 %v2088_v18  ;;  %v1119_v39 = vpop.permute.xlu0 %1118 }
 0x1d5   :  { %v614_v37 = vpop.permute.xlu1 %613 }
 0x1d6   :  { %1893 = vmatmul.mubr.msk.f32.vlgmr.msra.gmra.mrb[4].mxu0 %vm278_vm2, %v614_v37 }
 0x1d7   :  { %1901 = vmatpush3.xpose.msk.msra.mxu0 %vm278_vm2, %v787_v36  ;;  %1902 = vmatprep.mubr.msk.f32.mxu0 %vm2089_vm1, %v2088_v18 }
 0x1d8   :  { %1910 = vmatprep.subr.mxu0 %v2088_v18  ;;  %v1290_v41 = vpop.permute.xlu0 %1289 }
 0x1d9   :  { %v785_v38 = vpop.permute.xlu1 %784 }
 0x1da   :  { %1903 = vmatmul.mubr.msk.f32.vlgmr.msra.gmra.mrb[6].mxu0 %vm278_vm2, %v785_v38 }
 0x1db   :  { %1911 = vmatpush3.xpose.msk.msra.mxu0 %vm278_vm2, %v1858_v27  ;;  %1912 = vmatprep.mubr.msk.f32.mxu0 %vm2089_vm1, %v2088_v18 }
 0x1dc   :  { %1920 = vmatprep.subr.mxu0 %v2088_v18  ;;  %v1460_v43 = vpop.permute.xlu0 %1459 }
 0x1dd   :  { %v1117_v40 = vpop.permute.xlu1 %1116 }
 0x1de   :  { %1913 = vmatmul.mubr.msk.f32.vlgmr.msra.gmra.mrb[8].mxu0 %vm278_vm2, %v107_v30 }
 0x1df   :  { %1921 = vmatpush3.xpose.msk.msra.mxu0 %vm278_vm2, %v1119_v39  ;;  %1922 = vmatprep.mubr.msk.f32.mxu0 %vm2089_vm1, %v2088_v18 }
 0x1e0   :  { %1930 = vmatprep.subr.mxu0 %v2088_v18 }
 0x1e1   :  { %v1288_v42 = vpop.permute.xlu1 %1287 }
 0x1e2   :  { %1923 = vmatmul.mubr.msk.f32.vlgmr.msra.gmra.mrb[10].mxu0 %vm278_vm2, %v1117_v40 }
 0x1e3   :  { %1931 = vmatpush3.xpose.msk.msra.mxu0 %vm278_vm2, %v1290_v41  ;;  %1932 = vmatprep.mubr.msk.f32.mxu0 %vm2089_vm1, %v2088_v18 }
 0x1e4   :  { %1940 = vmatprep.subr.mxu0 %v2088_v18 }
 0x1e5   :  { %v1458_v44 = vpop.permute.xlu1 %1457 }
 0x1e6   :  { %1933 = vmatmul.mubr.msk.f32.vlgmr.msra.gmra.mrb[12].mxu0 %vm278_vm2, %v1288_v42 }
 0x1e7   :  { %1941 = vmatpush3.xpose.msk.msra.mxu0 %vm278_vm2, %v1460_v43  ;;  %1942 = vmatprep.mubr.msk.f32.mxu0 %vm2089_vm1, %v2088_v18 }
 0x1ea   :  { %1943 = vmatmul.mubr.msk.f32.vlgmr.msra.gmra.mrb[14].mxu0 %vm278_vm2, %v1458_v44 }
 0x231   :  { %v351_v45 = vpop.f32.mrb[4].mxu1 }
 0x232   :  { %v1874_v46 = vpop.f32.mrb[5].mxu1  ;;  %v356_v47 = vsel %vm355_vm3, %v351_v45, -inf }
 0x233   :  { %357 = vmax.xlane.f32.xlu0 %v356_v47 }
 0x2a5   :  { %v515_v48 = vpop.f32.mrb[2].mxu0 }
 0x2a6   :  { %v1884_v49 = vpop.f32.mrb[3].mxu0  ;;  %v519_v50 = vsel %vm355_vm3, %v515_v48, -inf }
 0x2a7   :  { %520 = vmax.xlane.f32.xlu1 %v519_v50 }
 0x2a9   :  { %v687_v51 = vpop.f32.mrb[4].mxu0 }
 0x2aa   :  { %v1894_v52 = vpop.f32.mrb[5].mxu0  ;;  %v691_v53 = vsel %vm355_vm3, %v687_v51, -inf }
 0x2ab   :  { %692 = vmax.xlane.f32.xlu0 %v691_v53 }
 0x2ad   :  { %v858_v54 = vpop.f32.mrb[6].mxu0 }
 0x2ae   :  { %v1904_v55 = vpop.f32.mrb[7].mxu0  ;;  %v862_v56 = vsel %vm355_vm3, %v858_v54, -inf }
 0x2af   :  { %863 = vmax.xlane.f32.xlu0 %v862_v56 }
 0x2b1   :  { %v1027_v57 = vpop.f32.mrb[8].mxu0 }
 0x2b2   :  { %v1914_v58 = vpop.f32.mrb[9].mxu0  ;;  %v1031_v59 = vsel %vm355_vm3, %v1027_v57, -inf }
 0x2b3   :  { %1032 = vmax.xlane.f32.xlu1 %v1031_v59 }
 0x2b5   :  { %v1190_v60 = vpop.f32.mrb[10].mxu0 }
 0x2b6   :  { %v1924_v61 = vpop.f32.mrb[11].mxu0  ;;  %v1194_v62 = vsel %vm355_vm3, %v1190_v60, -inf }
 0x2b7   :  { %1195 = vmax.xlane.f32.xlu0 %v1194_v62 }
 0x2b9   :  { %v1361_v63 = vpop.f32.mrb[12].mxu0 }
 0x2ba   :  { %v1934_v0 = vpop.f32.mrb[13].mxu0  ;;  %v1365_v1 = vsel %vm355_vm3, %v1361_v63, -inf }
 0x2bb   :  { %1366 = vmax.xlane.f32.xlu1 %v1365_v1 }
 0x2bd   :  { %v1531_v2 = vpop.f32.mrb[14].mxu0 }
 0x2be   :  { %v1944_v3 = vpop.f32.mrb[15].mxu0  ;;  %v1535_v4 = vsel %vm355_vm3, %v1531_v2, -inf }
 0x2bf   :  { %1536 = vmax.xlane.f32.xlu0 %v1535_v4 }
 0x2c0   :  { %v358_v5 = vpop.xlane.xlu0 %357 }
 0x2c1   :  { %v359_v6 = vsub.f32 %v351_v45, %v358_v5 }
 0x2c3   :  { %v360_v7 = vmul.f32 1.442695, %v359_v6 }
 0x2c5   :  { %2031 = vpow2.f32 %v360_v7 }
 0x2cc   :  { %531 = vrot.lane.b32.xlu1 %v2188_v35, %s2091_s10 }
 0x2cf   :  { %v2032_v8 = vpop.eup %2031 }
 0x2d0   :  { %v362_v9 = vsel %vm355_vm3, %v2032_v8, 0.0 }
 0x2f0   :  { %363 = vadd.xlane.f32.xlu1 %v362_v9 }
 0x301   :  { %873 = vrot.lane.b32.xlu1 %v2188_v35, %s2092_s1 }
 0x334   :  { %v521_v10 = vpop.xlane.xlu1 %520 }
 0x335   :  { %v522_v11 = vsub.f32 %v515_v48, %v521_v10 }
 0x337   :  { %v523_v12 = vmul.f32 1.442695, %v522_v11 }
 0x338   :  { %v693_v13 = vpop.xlane.xlu0 %692 }
 0x339   :  { %2033 = vpow2.f32 %v523_v12  ;;  %v694_v14 = vsub.f32 %v687_v51, %v693_v13 }
 0x33b   :  { %v695_v15 = vmul.f32 1.442695, %v694_v14 }
 0x33c   :  { %v864_v21 = vpop.xlane.xlu0 %863 }
 0x33d   :  { %2035 = vpow2.f32 %v695_v15  ;;  %v865_v22 = vsub.f32 %v858_v54, %v864_v21  ;;  %v1631_v21 = vld [vmem:[%s2343_s2 + $0x10] sm:$0xff] }
 0x33f   :  { %v866_v26 = vmul.f32 1.442695, %v865_v22  ;;  %v1632_v22 = vld [vmem:[%s2343_s2 + $0x18] sm:$0xff] }
 0x340   :  { %v1033_v23 = vpop.xlane.xlu1 %1032 }
 0x341   :  { %v1034_v25 = vsub.f32 %v1027_v57, %v1033_v23  ;;  %2037 = vpow2.f32 %v866_v26  ;;  %v1997_v23 = vpack.c.bf16 %v1632_v22, %v1631_v21  ;;  %v1633_v26 = vld [vmem:[%s2343_s2 + $0x20] sm:$0xff] }
 0x343   :  { %v2034_v16 = vpop.eup %2033  ;;  %v1035_v30 = vmul.f32 1.442695, %v1034_v25 }
 0x344   :  { %v525_v17 = vsel %vm355_vm3, %v2034_v16, 0.0  ;;  %v1196_v24 = vpop.xlane.xlu0 %1195 }
 0x345   :  { %526 = vadd.xlane.f32.xlu0 %v525_v17  ;;  %v1197_v27 = vsub.f32 %v1190_v60, %v1196_v24  ;;  %2039 = vpow2.f32 %v1035_v30  ;;  %v1635_v30 = vld [vmem:[%s2343_s2 + $0x30] sm:$0xff] }
 0x347   :  { %v2235_v19 = vpop.eup %2035  ;;  %v1198_v32 = vmul.f32 1.442695, %v1197_v27  ;;  %v1634_v27 = vld [vmem:[%s2343_s2 + $0x28] sm:$0xff] }
 0x348   :  { %v697_v20 = vsel %vm355_vm3, %v2235_v19, 0.0  ;;  %v1367_v28 = vpop.xlane.xlu1 %1366 }
 0x349   :  { %698 = vadd.xlane.f32.xlu1 %v697_v20  ;;  %v1368_v31 = vsub.f32 %v1361_v63, %v1367_v28  ;;  %2041 = vpow2.f32 %v1198_v32  ;;  %v2001_v28 = vpack.c.bf16 %v1634_v27, %v1633_v26 }
 0x34b   :  { %v1369_v36 = vmul.f32 1.442695, %v1368_v31  ;;  %v1636_v31 = vld [vmem:[%s2343_s2 + $0x38] sm:$0xff] }
 0x34c   :  { %v1537_v29 = vpop.xlane.xlu0 %1536  ;;  %v532_v39 = vpop.permute.xlu1 %531 }
 0x34d   :  { %v1538_v33 = vsub.f32 %v1531_v2, %v1537_v29  ;;  %2043 = vpow2.f32 %v1369_v36 }
 0x34f   :  { %v1539_v37 = vmul.f32 1.442695, %v1538_v33  ;;  %v2005_v33 = vpack.c.bf16 %v1636_v31, %v1635_v30 }
 0x351   :  { %2045 = vpow2.f32 %v1539_v37 }
 0x35a   :  { %1206 = vrot.lane.b32.xlu1 %v2185_v34, %s2091_s10 }
 0x35b   :  { %702 = vrot.lane.b32.xlu0 %v2188_v35, %s2090_s9  ;;  %v2038_v35 = vpop.eup %2037 }
 0x35c   :  { %v2040_v38 = vpop.eup %2039  ;;  %v868_v40 = vsel %vm355_vm3, %v2038_v35, 0.0 }
 0x35d   :  { %v2244_v41 = vpop.eup %2041  ;;  %v1037_v44 = vsel %vm355_vm3, %v2040_v38, 0.0 }
 0x35e   :  { %v2246_v42 = vpop.eup %2043  ;;  %v1200_v45 = vsel %vm355_vm3, %v2244_v41, 0.0 }
 0x35f   :  { %v2251_v46 = vpop.eup %2045  ;;  %v1371_v47 = vsel %vm355_vm3, %v2246_v42, 0.0 }
 0x360   :  { %v1541_v48 = vsel %vm355_vm3, %v2251_v46, 0.0 }
 0x37a   :  { %869 = vadd.xlane.f32.xlu0 %v868_v40 }
 0x37d   :  { %v364_v43 = vpop.xlane.xlu1 %363 }
 0x37e   :  { %2047 = vrcp.f32 %v364_v43  ;;  %1038 = vadd.xlane.f32.xlu1 %v1037_v44  ;;  %1201 = vadd.xlane.f32.xlu0 %v1200_v45 }
 0x381   :  { %v874_v51 = vpop.permute.xlu1 %873 }
 0x382   :  { %1372 = vadd.xlane.f32.xlu1 %v1371_v47  ;;  %1542 = vadd.xlane.f32.xlu0 %v1541_v48 }
 0x388   :  { %v2048_v49 = vpop.eup %2047 }
 0x389   :  { %v366_v50 = vmul.f32 %v2048_v49, %v2032_v8  ;;  %v1774_v49 = vld [vmem:[%s2344_s3] ss:$0 sm:$0xff] }
 0x38b   :  { %1878 = vmatmul.mubr.msk.f32.vlgmr.msra.gmra.mrb[6].mxu1 %vm355_vm3, %v366_v50 }
 0x38c   :  { %1886 = vmatpush3.msra.mxu1 %v532_v39  ;;  %1887 = vmatprep.mubr.msk.f32.mxu1 %vm2089_vm1, %v2088_v18 }
 0x38d   :  { %1895 = vmatprep.subr.mxu1 %v2088_v18 }
 0x393   :  { %1546 = vrot.lane.b32.xlu1 %v2185_v34, %s2092_s1 }
 0x398   :  { %1376 = vrot.lane.b32.xlu0 %v2185_v34, %s2090_s9 }
 0x3d2   :  { %v527_v52 = vpop.xlane.xlu0 %526 }
 0x3d3   :  { %2049 = vrcp.f32 %v527_v52 }
 0x3d6   :  { %v699_v53 = vpop.xlane.xlu1 %698  ;;  %v703_v56 = vpop.permute.xlu0 %702 }
 0x3d7   :  { %2051 = vrcp.f32 %v699_v53 }
 0x3da   :  { %v1207_v59 = vpop.permute.xlu1 %1206 }
 0x3dd   :  { %v2050_v54 = vpop.eup %2049 }
 0x3de   :  { %v529_v55 = vmul.f32 %v2050_v54, %v2034_v16 }
 0x3e0   :  { %1888 = vmatmul.mubr.msk.f32.vlgmr.msra.gmra.mrb[8].mxu1 %vm355_vm3, %v529_v55 }
 0x3e1   :  { %v2052_v57 = vpop.eup %2051  ;;  %1896 = vmatpush3.msra.mxu1 %v703_v56  ;;  %1897 = vmatprep.mubr.msk.f32.mxu1 %vm2089_vm1, %v2088_v18 }
 0x3e2   :  { %v701_v58 = vmul.f32 %v2052_v57, %v2235_v19  ;;  %1905 = vmatprep.subr.mxu1 %v2088_v18  ;;  %v1630_v19 = vld [vmem:[%s2343_s2 + $0x8] sm:$0xff] }
 0x3e4   :  { %1898 = vmatmul.mubr.msk.f32.vlgmr.msra.gmra.mrb[10].mxu1 %vm355_vm3, %v701_v58 }
 0x3e5   :  { %1906 = vmatpush3.msra.mxu1 %v874_v51  ;;  %1907 = vmatprep.mubr.msk.f32.mxu1 %vm2089_vm1, %v2088_v18 }
 0x3e6   :  { %1915 = vmatprep.subr.mxu1 %v2088_v18 }
 0x407   :  { %v870_v60 = vpop.xlane.xlu0 %869 }
 0x408   :  { %2053 = vrcp.f32 %v870_v60 }
 0x40b   :  { %v1039_v61 = vpop.xlane.xlu1 %1038  ;;  %v1202_v62 = vpop.xlane.xlu0 %1201 }
 0x40c   :  { %2055 = vrcp.f32 %v1039_v61 }
 0x40d   :  { %2057 = vrcp.f32 %v1202_v62 }
 0x40f   :  { %v1373_v63 = vpop.xlane.xlu1 %1372  ;;  %v1543_v2 = vpop.xlane.xlu0 %1542 }
 0x410   :  { %2059 = vrcp.f32 %v1373_v63 }
 0x411   :  { %2061 = vrcp.f32 %v1543_v2 }
 0x412   :  { %v2054_v0 = vpop.eup %2053 }
 0x413   :  { %v872_v1 = vmul.f32 %v2054_v0, %v2038_v35  ;;  %v1377_v8 = vpop.permute.xlu0 %1376  ;;  %v1547_v10 = vpop.permute.xlu1 %1546 }
 0x415   :  { %1908 = vmatmul.mubr.msk.f32.vlgmr.msra.gmra.mrb[12].mxu1 %vm355_vm3, %v872_v1 }
 0x416   :  { %v2056_v3 = vpop.eup %2055  ;;  %1916 = vmatpush3.msra.mxu1 %v2185_v34  ;;  %1917 = vmatprep.mubr.msk.f32.mxu1 %vm2089_vm1, %v2088_v18 }
 0x417   :  { %v1041_v4 = vmul.f32 %v2056_v3, %v2040_v38  ;;  %1925 = vmatprep.subr.mxu1 %v2088_v18  ;;  %v2058_v5 = vpop.eup %2057 }
 0x418   :  { %v1204_v6 = vmul.f32 %v2058_v5, %v2244_v41 }
 0x419   :  { %1918 = vmatmul.mubr.msk.f32.vlgmr.msra.gmra.mrb[14].mxu1 %vm355_vm3, %v1041_v4 }
 0x41a   :  { %1926 = vmatpush3.msra.mxu1 %v1207_v59  ;;  %1927 = vmatprep.mubr.msk.f32.mxu1 %vm2089_vm1, %v2088_v18  ;;  %v2060_v7 = vpop.eup %2059 }
 0x41b   :  { %1935 = vmatprep.subr.mxu1 %v2088_v18  ;;  %v1375_v34 = vmul.f32 %v2060_v7, %v2246_v42  ;;  %v2062_v9 = vpop.eup %2061 }
 0x41c   :  { %v1545_v11 = vmul.f32 %v2062_v9, %v2251_v46 }
 0x41d   :  { %1928 = vmatmul.mubr.msk.f32.vlgmr.msra.gmra.mrb[16].mxu1 %vm355_vm3, %v1204_v6 }
 0x41e   :  { %1936 = vmatpush3.msra.mxu1 %v1377_v8  ;;  %1937 = vmatprep.mubr.msk.f32.mxu1 %vm2089_vm1, %v2088_v18 }
 0x41f   :  { %1945 = vmatprep.subr.mxu1 %v2088_v18 }
 0x421   :  { %1938 = vmatmul.mubr.msk.f32.vlgmr.msra.gmra.mrb[18].mxu1 %vm355_vm3, %v1375_v34 }
 0x422   :  { %1946 = vmatpush3.msra.mxu1 %v1547_v10  ;;  %1947 = vmatprep.mubr.msk.f32.mxu1 %vm2089_vm1, %v2088_v18  ;;  %v1629_v18 = vld [vmem:[%s2343_s2] sm:$0xff] }
 0x423   :  { %v1993_v20 = vpack.c.bf16 %v1630_v19, %v1629_v18 }
 0x425   :  { %1948 = vmatmul.mubr.msk.f32.vlgmr.msra.gmra.mrb[20].mxu1 %vm355_vm3, %v1545_v11  ;;  %1994 = vmatprep.subr.bf16.mxu0 %v1993_v20 }
 0x426   :  { %1996 = vmatpush3.bf16.msra.mxu0 %v1993_v20 }
 0x427   :  { %1998 = vmatprep.subr.bf16.mxu0 %v1997_v23 }
 0x42a   :  { %2000 = vmatpush3.bf16.msra.mxu0 %v1997_v23 }
 0x42b   :  { %2002 = vmatprep.subr.bf16.mxu0 %v2001_v28 }
 0x42e   :  { %2004 = vmatpush3.bf16.msra.mxu0 %v2001_v28 }
 0x42f   :  { %2006 = vmatprep.subr.bf16.mxu0 %v2005_v33 }
 0x432   :  { %2008 = vmatpush3.bf16.msra.mxu0 %v2005_v33 }
 0x45e   :  { %v436_v12 = vpop.f32.mrb[6].mxu1 }
 0x45f   :  { %440 = vst.msk [vmem:[#allocation2] sm:$0xff] %vm278_vm2, %v436_v12  ;;  %v1879_v13 = vpop.f32.mrb[7].mxu1 }
 0x4b3   :  { %v603_v14 = vpop.f32.mrb[8].mxu1 }
 0x4b4   :  { %608 = vrot.lane.b32.xlu0 %v603_v14, %s2093_s11  ;;  %v1889_v15 = vpop.f32.mrb[9].mxu1 }
 0x4b7   :  { %v774_v16 = vpop.f32.mrb[10].mxu1 }
 0x4b8   :  { %779 = vrot.lane.b32.xlu1 %v774_v16, %s2094_s12  ;;  %v1899_v17 = vpop.f32.mrb[11].mxu1 }
 0x4e8   :  { %v945_v24 = vpop.f32.mrb[12].mxu1 }
 0x4e9   :  { %950 = vrot.lane.b32.xlu1 %v945_v24, %s2095_s21  ;;  %v1909_v25 = vpop.f32.mrb[13].mxu1 }
 0x4ec   :  { %v1111_v29 = vpop.f32.mrb[14].mxu1 }
 0x4ed   :  { %1115 = vst.msk [vmem:[#allocation2 + $0x8] sm:$0xff] %vm278_vm2, %v1111_v29  ;;  %v1919_v32 = vpop.f32.mrb[15].mxu1 }
 0x4f0   :  { %v1278_v36 = vpop.f32.mrb[16].mxu1 }
 0x4f1   :  { %1283 = vrot.lane.b32.xlu0 %v1278_v36, %s2093_s11  ;;  %v1929_v37 = vpop.f32.mrb[17].mxu1 }
 0x4f4   :  { %v1448_v35 = vpop.f32.mrb[18].mxu1 }
 0x4f5   :  { %1453 = vrot.lane.b32.xlu0 %v1448_v35, %s2094_s12  ;;  %v1939_v38 = vpop.f32.mrb[19].mxu1 }
 0x4f8   :  { %v1618_v39 = vpop.f32.mrb[20].mxu1 }
 0x4f9   :  { %1623 = vrot.lane.b32.xlu1 %v1618_v39, %s2095_s21  ;;  %v1949_v40 = vpop.f32.mrb[21].mxu1 }
 0x526   :  { %v609_v41 = vpop.permute.xlu0 %608 }
 0x527   :  { %612 = vst.msk [vmem:[#allocation2] sm:$0xff] %vm611_vm4, %v609_v41 }
 0x52a   :  { %v780_v42 = vpop.permute.xlu1 %779 }
 0x52b   :  { %783 = vst.msk [vmem:[#allocation2] sm:$0xff] %vm782_vm5, %v780_v42 }
 0x55b   :  { %v951_v43 = vpop.permute.xlu1 %950 }
 0x55c   :  { %954 = vst.msk [vmem:[#allocation2] sm:$0xff] %vm953_vm6, %v951_v43 }
 0x563   :  { %v1284_v44 = vpop.permute.xlu0 %1283  ;;  %v1627_v45 = vld [vmem:[#allocation2] sm:$0xff] }
 0x564   :  { %1286 = vst.msk [vmem:[#allocation2 + $0x8] sm:$0xff] %vm611_vm4, %v1284_v44  ;;  %1966 = vmatprep.mubr.msk.f32.mxu0 %vm1644_vm7, %v1627_v45 }
 0x567   :  { %v1454_v46 = vpop.permute.xlu0 %1453 }
 0x568   :  { %1456 = vst.msk [vmem:[#allocation2 + $0x8] sm:$0xff] %vm782_vm5, %v1454_v46 }
 0x56b   :  { %v1624_v47 = vpop.permute.xlu1 %1623 }
 0x56c   :  { %1626 = vst.msk [vmem:[#allocation2 + $0x8] sm:$0xff] %vm953_vm6, %v1624_v47 }
 0x573   :  { %v1628_v48 = vld [vmem:[#allocation2 + $0x8] sm:$0xff] }
 0x574   :  { %1967 = vmatmul.mubr.msk.f32.vlgmr.msra.gmra.mrb[16].mxu0 %vm1644_vm7, %v1628_v48 }
 0x647   :  { %v1968_v50 = vpop.f32.mrb[16].mxu0 }
 0x648   :  { %v1723_v51 = vadd.f32 %v1968_v50, %v1774_v49  ;;  %v1717_v52 = vpop.f32.mrb[17].mxu0 }
 0x649   :  { %v1718_v53 = vadd.f32 %v1774_v49, %v1717_v52 }
 0x64a   :  { %1727 = vst.msk [vmem:[#allocation3 + $0x8] sm:$0xff] %vm24_vm0, %v1723_v51 }
 0x64b   :  { %1726 = vst.msk [vmem:[#allocation3] sm:$0xff] %vm24_vm0, %v1718_v53 }
 0x64c   :  { %2074 = shalt.err (!%p2071_p4)
}
 0x64d   :  { %s2075_s8 = scalar_lea.hbm %s2345_s4, 256 }
 0x64e   :  { %p2076_p5 = scmp.ne.s32.totalorder %s2345_s4, %s2075_s8  ;;  %p2079_p6 = scmp.lt.u32.totalorder %s2075_s8, %s2345_s4 }
 0x650   :  { %p2081_p7 = pnand %p2079_p6, %p2076_p5 }
 0x652   :  { %2084 = shalt.err (!%p2081_p7)
}
 0x653   :  { %s2097_s12 = smov 128   ;;  %s2098_s13 = smov 8  }
 0x654   :  { %1739 = dma.vmem_to_hbm [thread:$0]  %s1734_s5, 256, %s2345_s4, [#allocation4], %s2097_s12, %s2097_s12, %s2098_s13  }
 0x655   :  { %2085 = dma.done.wait [#allocation4], 256  }
 0x656   :  { %2086 = vsyncadd [#allocation4], 4294967040 }
 0x657   :  { %1743 = vsyncpa [#allocation4], 1 }

</bundles_post_ra>
